<compile_context>
chip_gen: v7x
topology: tpu7x:2x2x1
jax: 0.10.0
libtpu: 0.0.40
codegen_flags: <defaults>
</compile_context>

<pallas_src>
import functools

import jax
import jax.numpy as jnp
from jax.experimental import pallas as pl
from jax.experimental.pallas import tpu as pltpu


def _fdpa_kernel(x_ref, w_ref, p_ref, k_ref, o_ref, *, nb, c, hw):
    """One grid step: NB batch elements, all C channels.

    x_ref: (NB, C, HW)  input slab (HW on the lane axis)
    w_ref: (2M, M)      bf16 fused conv weight, M = NB*C
                        rows [0:M)  = blockdiag(W1), rows [M:2M) = blockdiag(W2)
    p_ref: (M, 4)       f32 per-row params [b1, b2, alpha/(H*W), beta]
    k_ref: (HW, 2*HW)   bf16 [Kre | Kim], K = F_H (kron) F_W
    o_ref: (NB, C, HW)  output slab
    """
    f32 = jnp.float32
    m = nb * c

    x = x_ref[...].reshape(m, hw)            # free reshape (identical layout)

    # conv1 + conv2 for the whole batch block as ONE bf16 MXU dot (2M rows).
    x12 = jnp.dot(w_ref[...], x.astype(w_ref.dtype),
                  preferred_element_type=f32)                    # (2M, HW)

    params = p_ref[...].astype(f32)                              # (M, 4)
    b1, b2 = params[:, 0:1], params[:, 1:2]
    alpha_s, beta = params[:, 2:3], params[:, 3:4]

    x1 = x12[:m] + b1                                            # (M, HW)
    x2 = x12[m:] + b2

    # fft2(x2): x2 is real -> one dot against [Kre | Kim] yields re & im halves.
    k = k_ref[...]                                               # (HW, 2HW) bf16
    f = jnp.dot(x2.astype(k.dtype), k, preferred_element_type=f32)  # (M, 2HW)

    # Elementwise complex scale by the (real) x1.
    y_re = x1 * f[:, :hw]
    y_im = x1 * f[:, hw:]

    # ifft2 (right-multiply by conj(K)) as ONE dot on row-stacked [y_re; y_im]:
    # 2M LHS rows per K weight push instead of four M-row dots.
    y = jnp.concatenate([y_re, y_im], axis=0).astype(k.dtype)    # (2M, HW)
    z = jnp.dot(y, k, preferred_element_type=f32)                # (2M, 2HW)
    z_re = z[:m, :hw] + z[m:, hw:]        # y_re@Kre + y_im@Kim
    z_im = z[m:, :hw] - z[:m, hw:]        # y_im@Kre - y_re@Kim

    mag = jnp.sqrt(z_re * z_re + z_im * z_im)   # 1/(H*W) already folded in alpha_s

    out = mag * alpha_s + x.astype(f32) * beta
    o_ref[...] = out.reshape(nb, c, hw).astype(o_ref.dtype)


def _dft_factors(n):
    """Real/imag parts of the n-point DFT matrix F[a,b] = exp(-2*pi*i*a*b/n)."""
    idx = jnp.arange(n, dtype=jnp.float32)
    ang = (-2.0 * jnp.pi / n) * (idx[:, None] * idx[None, :])
    return jnp.cos(ang), jnp.sin(ang)


def _pick_batch_block(n, c, target_rows=256):
    """Batch elements per grid step: grow M = NB*C toward the MXU height, but
    keep >= 2 grid steps when the batch allows (both v7x TensorCores busy)."""
    nb = max(1, min(n, max(1, target_rows // max(c, 1))))
    while nb > 1 and n // nb < 2:
        nb -= 1
    while n % nb:
        nb -= 1
    return nb


def fdpa_pallas(x, w1, b1, w2, b2, alpha, beta, *, batch_block=None):
    """FDPA forward.

    x:      (N, C, H, W)
    w1, w2: (C, C, 1, 1)   PyTorch 1x1 Conv2d weights
    b1, b2: (C,)           biases
    alpha:  (C, 1, 1)
    beta:   (C, 1, 1)
    returns (N, C, H, W)
    """
    N, C, H, W = x.shape
    HW = H * W
    nb = batch_block if batch_block is not None else _pick_batch_block(N, C)
    assert N % nb == 0, "batch block must divide N"
    M = nb * C
    assert M % 8 == 0 and HW % 128 == 0, "need sublane/lane-aligned tiles"

    # DFT "weights": K = F_H (kron) F_W, stored bf16 as [Kre | Kim].
    fh_re, fh_im = _dft_factors(H)
    fw_re, fw_im = _dft_factors(W)
    k_re = jnp.kron(fh_re, fw_re) - jnp.kron(fh_im, fw_im)          # (HW, HW)
    k_im = jnp.kron(fh_re, fw_im) + jnp.kron(fh_im, fw_re)          # (HW, HW)
    k_fwd = jnp.concatenate([k_re, k_im], axis=1).astype(jnp.bfloat16)  # (HW, 2HW)

    # Fused conv1/conv2 weight, block-diagonal over the nb batch elements so one
    # (2M, M) x (M, HW) dot performs both 1x1 convs for the whole block.
    w1_2d = w1.reshape(C, C).astype(jnp.float32)
    w2_2d = w2.reshape(C, C).astype(jnp.float32)
    eye_nb = jnp.eye(nb, dtype=jnp.float32)
    w_big = jnp.concatenate(
        [jnp.kron(eye_nb, w1_2d), jnp.kron(eye_nb, w2_2d)], axis=0
    ).astype(jnp.bfloat16)                                           # (2M, M)

    # Packed per-row params (one DMA instead of four): [b1, b2, alpha/HW, beta].
    params = jnp.stack(
        [b1.reshape(C), b2.reshape(C),
         alpha.reshape(C) * (1.0 / float(HW)), beta.reshape(C)], axis=1)
    params = jnp.tile(params, (nb, 1)).astype(jnp.float32)           # (M, 4)

    # Free reshape only (no transposes, no pads): lane-dense (N, C, H*W).
    x_flat = x.reshape(N, C, HW)

    kernel = functools.partial(_fdpa_kernel, nb=nb, c=C, hw=HW)

    out_flat = pl.pallas_call(
        kernel,
        out_shape=jax.ShapeDtypeStruct((N, C, HW), x.dtype),
        grid_spec=pltpu.PrefetchScalarGridSpec(
            num_scalar_prefetch=0,
            grid=(N // nb,),
            in_specs=[
                pl.BlockSpec((nb, C, HW), lambda n: (n, 0, 0)),    # x block
                pl.BlockSpec((2 * M, M), lambda n: (0, 0)),        # fused conv W
                pl.BlockSpec((M, 4), lambda n: (0, 0)),            # packed params
                pl.BlockSpec((HW, 2 * HW), lambda n: (0, 0)),      # [Kre | Kim]
            ],
            out_specs=pl.BlockSpec((nb, C, HW), lambda n: (n, 0, 0)),
        ),
        compiler_params=pltpu.CompilerParams(
            dimension_semantics=("parallel",)),
    )(x_flat, w_big, params, k_fwd)

    return out_flat.reshape(N, C, H, W)


def _fdpa_reference(x, w1, b1, w2, b2, alpha, beta):
    """Pure-JAX reference mirroring the PyTorch forward."""
    f32 = jnp.float32
    x32 = x.astype(f32)
    w1_2d = w1[:, :, 0, 0].astype(f32)
    w2_2d = w2[:, :, 0, 0].astype(f32)
    hi = jax.lax.Precision.HIGHEST
    x1 = jnp.einsum("oi,nihw->nohw", w1_2d, x32,
                    precision=hi) + b1.astype(f32)[None, :, None, None]
    x2 = jnp.einsum("oi,nihw->nohw", w2_2d, x32,
                    precision=hi) + b2.astype(f32)[None, :, None, None]
    x2f = jnp.fft.fft2(x2)                      # over (-2, -1)
    out = x1 * x2f
    out = jnp.fft.ifft2(out, axes=(-2, -1))
    out = jnp.abs(out)
    return out * alpha.astype(f32)[None] + x32 * beta.astype(f32)[None]


if __name__ == "__main__":
    # Small shapes consistent with the module: batch=2, dim=32, spatial=16.
    N, C, H, W = 2, 32, 16, 16

    key = jax.random.PRNGKey(0)
    ks = jax.random.split(key, 7)
    x = jax.random.normal(ks[0], (N, C, H, W), dtype=jnp.float32)
    w1 = jax.random.normal(ks[1], (C, C, 1, 1), dtype=jnp.float32) * 0.1
    b1 = jax.random.normal(ks[2], (C,), dtype=jnp.float32) * 0.1
    w2 = jax.random.normal(ks[3], (C, C, 1, 1), dtype=jnp.float32) * 0.1
    b2 = jax.random.normal(ks[4], (C,), dtype=jnp.float32) * 0.1
    # Module initializes alpha=0, beta=1; perturb so the frequency-domain
    # branch is actually exercised by the check.
    alpha = jax.random.normal(ks[5], (C, 1, 1), dtype=jnp.float32) * 0.1
    beta = 1.0 + jax.random.normal(ks[6], (C, 1, 1), dtype=jnp.float32) * 0.1

    out = fdpa_pallas(x, w1, b1, w2, b2, alpha, beta)
    out = jax.block_until_ready(out)

    ref = _fdpa_reference(x, w1, b1, w2, b2, alpha, beta)
    assert out.shape == (N, C, H, W)
    # Tolerance covers bf16 MXU operands (with f32 accumulation) vs the
    # HIGHEST-precision / native-FFT reference.
    max_err = jnp.max(jnp.abs(out.astype(jnp.float32) - ref))
    assert jnp.allclose(out.astype(jnp.float32), ref, atol=2e-2, rtol=2e-2), (
        f"Pallas FDPA mismatch vs reference (max abs err {max_err})")

    print("KERNEL_OK")
</pallas_src>

<mosaic_0001>
module attributes {stable_mosaic.version = 11 : i64} {
  func.func @_fdpa_kernel(%arg0: i32, %arg1: memref<1x32x256xf32, #tpu.memory_space<vmem>>, %arg2: memref<64x32xbf16, #tpu.memory_space<vmem>>, %arg3: memref<32x4xf32, #tpu.memory_space<vmem>>, %arg4: memref<256x512xbf16, #tpu.memory_space<vmem>>, %arg5: memref<1x32x256xf32, #tpu.memory_space<vmem>>) attributes {dimension_semantics = [#tpu.dimension_semantics<parallel>], iteration_bounds = array<i64: 2>, scalar_prefetch = 0 : i64, scratch_operands = 0 : i64, tpu.core_type = #tpu.core_type<tc>, window_params = [{transform_indices = @transform_0, window_bounds = array<i64: 1, 32, 256>}, {pipeline_mode = #tpu.pipeline_mode<synchronous>, transform_indices = @transform_1, window_bounds = array<i64: 64, 32>}, {pipeline_mode = #tpu.pipeline_mode<synchronous>, transform_indices = @transform_2, window_bounds = array<i64: 32, 4>}, {pipeline_mode = #tpu.pipeline_mode<synchronous>, transform_indices = @transform_3, window_bounds = array<i64: 256, 512>}, {transform_indices = @transform_4, window_bounds = array<i64: 1, 32, 256>}]} {
    %c0 = arith.constant 0 : index
    %c0_0 = arith.constant 0 : index
    %c0_1 = arith.constant 0 : index
    %0 = vector.load %arg1[%c0, %c0_0, %c0_1] : memref<1x32x256xf32, #tpu.memory_space<vmem>>, vector<1x32x256xf32>
    %1 = vector.shape_cast %0 : vector<1x32x256xf32> to vector<32x256xf32>
    %c0_2 = arith.constant 0 : index
    %c0_3 = arith.constant 0 : index
    %2 = vector.load %arg2[%c0_2, %c0_3] : memref<64x32xbf16, #tpu.memory_space<vmem>>, vector<64x32xbf16>
    %3 = arith.truncf %1 : vector<32x256xf32> to vector<32x256xbf16>
    %cst = arith.constant dense<0.000000e+00> : vector<64x256xf32>
    %4 = tpu.matmul %2, %3, %cst {dimension_numbers = #tpu.dot_dimension_numbers<[1], [0], [0], [1], [0, 0, 1, 1], [], []>} : vector<64x32xbf16>, vector<32x256xbf16>, vector<64x256xf32> -> vector<64x256xf32>
    %c0_4 = arith.constant 0 : index
    %c0_5 = arith.constant 0 : index
    %5 = vector.load %arg3[%c0_4, %c0_5] : memref<32x4xf32, #tpu.memory_space<vmem>>, vector<32x4xf32>
    %6 = vector.extract_strided_slice %5 {offsets = [0, 0], sizes = [32, 1], strides = [1, 1]} : vector<32x4xf32> to vector<32x1xf32>
    %7 = vector.extract_strided_slice %5 {offsets = [0, 1], sizes = [32, 1], strides = [1, 1]} : vector<32x4xf32> to vector<32x1xf32>
    %8 = vector.extract_strided_slice %5 {offsets = [0, 2], sizes = [32, 1], strides = [1, 1]} : vector<32x4xf32> to vector<32x1xf32>
    %9 = vector.extract_strided_slice %5 {offsets = [0, 3], sizes = [32, 1], strides = [1, 1]} : vector<32x4xf32> to vector<32x1xf32>
    %10 = vector.extract_strided_slice %4 {offsets = [0, 0], sizes = [32, 256], strides = [1, 1]} : vector<64x256xf32> to vector<32x256xf32>
    %11 = vector.broadcast %6 : vector<32x1xf32> to vector<32x256xf32>
    %12 = arith.addf %10, %11 : vector<32x256xf32>
    %13 = vector.extract_strided_slice %4 {offsets = [32, 0], sizes = [32, 256], strides = [1, 1]} : vector<64x256xf32> to vector<32x256xf32>
    %14 = vector.broadcast %7 : vector<32x1xf32> to vector<32x256xf32>
    %15 = arith.addf %13, %14 : vector<32x256xf32>
    %c0_6 = arith.constant 0 : index
    %c0_7 = arith.constant 0 : index
    %16 = vector.load %arg4[%c0_6, %c0_7] : memref<256x512xbf16, #tpu.memory_space<vmem>>, vector<256x512xbf16>
    %17 = arith.truncf %15 : vector<32x256xf32> to vector<32x256xbf16>
    %cst_8 = arith.constant dense<0.000000e+00> : vector<32x512xf32>
    %18 = tpu.matmul %17, %16, %cst_8 {dimension_numbers = #tpu.dot_dimension_numbers<[1], [0], [0], [1], [0, 0, 1, 1], [], []>} : vector<32x256xbf16>, vector<256x512xbf16>, vector<32x512xf32> -> vector<32x512xf32>
    %19 = vector.extract_strided_slice %18 {offsets = [0, 0], sizes = [32, 256], strides = [1, 1]} : vector<32x512xf32> to vector<32x256xf32>
    %20 = arith.mulf %12, %19 : vector<32x256xf32>
    %21 = vector.extract_strided_slice %18 {offsets = [0, 256], sizes = [32, 256], strides = [1, 1]} : vector<32x512xf32> to vector<32x256xf32>
    %22 = arith.mulf %12, %21 : vector<32x256xf32>
    %23 = tpu.concatenate %20, %22 in 0 : vector<32x256xf32>, vector<32x256xf32> -> vector<64x256xf32>
    %24 = arith.truncf %23 : vector<64x256xf32> to vector<64x256xbf16>
    %cst_9 = arith.constant dense<0.000000e+00> : vector<64x512xf32>
    %25 = tpu.matmul %24, %16, %cst_9 {dimension_numbers = #tpu.dot_dimension_numbers<[1], [0], [0], [1], [0, 0, 1, 1], [], []>} : vector<64x256xbf16>, vector<256x512xbf16>, vector<64x512xf32> -> vector<64x512xf32>
    %26 = vector.extract_strided_slice %25 {offsets = [0, 0], sizes = [32, 256], strides = [1, 1]} : vector<64x512xf32> to vector<32x256xf32>
    %27 = vector.extract_strided_slice %25 {offsets = [32, 256], sizes = [32, 256], strides = [1, 1]} : vector<64x512xf32> to vector<32x256xf32>
    %28 = arith.addf %26, %27 : vector<32x256xf32>
    %29 = vector.extract_strided_slice %25 {offsets = [32, 0], sizes = [32, 256], strides = [1, 1]} : vector<64x512xf32> to vector<32x256xf32>
    %30 = vector.extract_strided_slice %25 {offsets = [0, 256], sizes = [32, 256], strides = [1, 1]} : vector<64x512xf32> to vector<32x256xf32>
    %31 = arith.subf %29, %30 : vector<32x256xf32>
    %32 = arith.mulf %28, %28 : vector<32x256xf32>
    %33 = arith.mulf %31, %31 : vector<32x256xf32>
    %34 = arith.addf %32, %33 : vector<32x256xf32>
    %35 = math.sqrt %34 : vector<32x256xf32>
    %36 = vector.broadcast %8 : vector<32x1xf32> to vector<32x256xf32>
    %37 = arith.mulf %35, %36 : vector<32x256xf32>
    %38 = vector.broadcast %9 : vector<32x1xf32> to vector<32x256xf32>
    %39 = arith.mulf %1, %38 : vector<32x256xf32>
    %40 = arith.addf %37, %39 : vector<32x256xf32>
    %41 = vector.shape_cast %40 : vector<32x256xf32> to vector<1x32x256xf32>
    %c0_10 = arith.constant 0 : index
    %c0_11 = arith.constant 0 : index
    %c0_12 = arith.constant 0 : index
    %42 = vector.load %arg5[%c0_10, %c0_11, %c0_12] : memref<1x32x256xf32, #tpu.memory_space<vmem>>, vector<1x32x256xf32>
    tpu.vector_store %arg5[%c0_10, %c0_11, %c0_12], %41 {strides = array<i32>} : memref<1x32x256xf32, #tpu.memory_space<vmem>>, vector<1x32x256xf32>,
    return
  }
  func.func @transform_0(%arg0: i32) -> (i32, i32, i32) {
    %c0_i32 = arith.constant 0 : i32
    %c0_i32_0 = arith.constant 0 : i32
    %c0_i32_1 = arith.constant 0 : i32
    return %arg0, %c0_i32, %c0_i32_0 : i32, i32, i32
  }
  func.func @transform_1(%arg0: i32) -> (i32, i32) {
    %c0_i32 = arith.constant 0 : i32
    %c0_i32_0 = arith.constant 0 : i32
    %c0_i32_1 = arith.constant 0 : i32
    return %c0_i32, %c0_i32_0 : i32, i32
  }
  func.func @transform_2(%arg0: i32) -> (i32, i32) {
    %c0_i32 = arith.constant 0 : i32
    %c0_i32_0 = arith.constant 0 : i32
    %c0_i32_1 = arith.constant 0 : i32
    return %c0_i32, %c0_i32_0 : i32, i32
  }
  func.func @transform_3(%arg0: i32) -> (i32, i32) {
    %c0_i32 = arith.constant 0 : i32
    %c0_i32_0 = arith.constant 0 : i32
    %c0_i32_1 = arith.constant 0 : i32
    return %c0_i32, %c0_i32_0 : i32, i32
  }
  func.func @transform_4(%arg0: i32) -> (i32, i32, i32) {
    %c0_i32 = arith.constant 0 : i32
    %c0_i32_0 = arith.constant 0 : i32
    %c0_i32_1 = arith.constant 0 : i32
    return %arg0, %c0_i32, %c0_i32_0 : i32, i32, i32
  }
}

</mosaic_0001>

<bundles_post_ra>
// kernel: tpu_custom_call.1
= control target key start
LH: loop header
LB: loop body
LE: loop exit
PB: predicated region body
PF: predicated region fallthrough
CT: control target
= control target key end

     0   :  { %9 = vsyncpa [#allocation3], 0  ;;  %s2344_s0 = inlined_call_operand.hbm [shape: f32[2,32,256], index: 0, kind: input, shape index: {}]   ;;  %s2345_s1 = inlined_call_operand.vmem [shape: bf16[64,32], index: 1, kind: input, shape index: {}]   ;;  %s2346_s2 = inlined_call_operand.vmem [shape: f32[32,4], index: 2, kind: input, shape index: {}]   ;;  %s2347_s3 = inlined_call_operand.hbm [shape: bf16[256,512], index: 3, kind: input, shape index: {}]   ;;  %s2348_s4 = inlined_call_operand.hbm [shape: f32[2,32,256], index: 4, kind: output, shape index: {}]  }
   0x1   :  { %11 = vsyncpa [#allocation3 + $0x1], 0 }
   0x2   :  { %12 = vsyncpa [#allocation6], 0 }
   0x3   :  { %13 = vsyncpa [#allocation4], 0 }
   0x4   :  { %15 = vsyncpa [#allocation4 + $0x1], 0  ;;  %s1792_s15 = smov 0   ;;  %s1794_s16 = smov 0  }
   0x5   :  { %s1796_s17 = smov 0   ;;  %s1798_s18 = smov 0  }
   0x6 LB: > { %s1813_s19 = sadd.s32 4294967295, %s1754_s18   ;;  %s1335_s20 = sadd.s32 4294967294, %s1754_s18   ;;  %s1754_s18 = sphi %s1798_s18, %s2368_s18   ;;  %s1750_s17 = sphi %s1796_s17, %s2367_s17   ;;  %s1746_s16 = sphi %s1794_s16, %s2366_s16   ;;  %s1742_s15 = sphi %s1792_s15, %s2365_s15  }
   0x7   : > { %p41_p0 = scmp.ne.s32.totalorder %s1746_s16, %s1742_s15  ;;  %p2349_p1 = scmp.eq.s32.totalorder %s1813_s19, 0 }
   0x8   : > { %p134_p3 = scmp.eq.s32.totalorder %s1335_s20, 1  ;;  %p1336_p5 = scmp.ge.s32.totalorder %s1754_s18, 1 }
   0x9   : > { %p1822_p4 = por %p2349_p1, %p41_p0  ;;  %p141_p7 = scmp.lt.s32.totalorder %s1754_s18, 3 }
   0xa   : > { %p1827_p6 = por %p134_p3, %p41_p0  ;;  %s1756_s24 = smov [#allocation5]  }
   0xb   : > { %s2352_s21 = scalar_select %p1822_p4, 1, 0 }
   0xc   : > { %s2353_s22 = scalar_select %p1827_p6, 1, 0 }
   0xd   : > { %p1832_p8 = pnand %p1336_p5, %p141_p7  ;;  %s159_s25 = sshll.u32 %s1756_s24, 4  ;;  %s1836_s25 = int_to_ptr.vmem [resolvable:$true] %s159_s25 }
   0xe   : > { %s1848_s27 = sadd.s32 1, %s1754_s18   ;;  %s28_s28 = sadd.s32 1, %s1750_s17 }
   0xf   : > { %s2354_s23 = scalar_select %p1832_p8, 1, 0 }
  0x10   : > { %p1441_p9 = pneg %p1832_p8  ;;  %s25_s29 = ssub.s32 %s1754_s18, %s1848_s27 }
  0x11   : > { %s1626_s6 = scalar_lea.hbm %s2347_s3, 8192 }
  0x12   : > { %p1843_p11 = pnand %p1441_p9, %p2349_p1  ;;  %p1627_p12 = scmp.ne.s32.totalorder %s2347_s3, %s1626_s6 }
  0x13   : > { %p1633_p5 = scmp.lt.u32.totalorder %s1626_s6, %s2347_s3 }
  0x14   : > { %p1628_p13 = pneg %p1843_p11 }
  0x16   : > { %p1629_p0 = pnand %p1628_p13, %p1627_p12 }
  0x18   : > { %p1630_p3 = pneg %p1629_p0 }
  0x1a   : > { %p1635_p7 = pnand %p1633_p5, %p1630_p3 }
  0x1c   : > { %1638 = shalt.err (!%p1635_p7)
}
  0x1d   : > { %s1639_s11 = scalar_lea.vmem %s1836_s25, 8192  ;;  %p1647_p2 = scmp.lt.s32.totalorder %s1836_s25, %s1836_s25 }
  0x1e   : > { %p1640_p9 = scmp.ne.s32.totalorder %s1836_s25, %s1639_s11  ;;  %p1648_p6 = scmp.lt.s32.totalorder %s1639_s11, %s1639_s11 }
  0x20   : > { %p1642_p10 = pnand %p1640_p9, %p1628_p13  ;;  %p1649_p4 = por %p1648_p6, %p1647_p2 }
  0x22   : > { %p1643_p1 = pneg %p1642_p10 }
  0x24   : > { %p1650_p8 = pnand %p1649_p4, %p1643_p1 }
  0x26   : > { %1653 = shalt.err (!%p1650_p8)
}
  0x27   : > { %s1757_s12 = smov 256   ;;  %s1758_s13 = smov 16  }
  0x28   : > { %1444 = dma.hbm_to_vmem [thread:$0]  (!%p1843_p11), %s2347_s3, 8192, %s1836_s25, [#allocation6], %s1757_s12, %s1757_s12, %s1758_s13  }
  0x29   : > { %p26_p1 = scmp.eq.s32.totalorder %s25_s29, 0  ;;  %p35_p2 = scmp.ne.s32.totalorder %s1750_s17, %s1746_s16 }
  0x2a   : > { %p36_p4 = scmp.eq.s32.totalorder %s1754_s18, 0  ;;  %p1454_p6 = scmp.lt.s32.totalorder %s1754_s18, 2 }
  0x2b   : > { %s1882_s24 = scalar_select %p26_p1, %s1750_s17, %s28_s28  }
  0x2c   : > { %p37_p8 = por %p36_p4, %p35_p2  ;;  %p2356_p10 = scmp.eq.s32.totalorder %s1813_s19, 1 }
  0x2d   : > { %s173_s26 = sand.u32 1, %s1750_s17   ;;  %s1423_s5 = sshll.u32 %s1754_s18, 10 }
  0x2e   : > { %p1886_p12 = por %p2356_p10, %p35_p2  ;;  %s1339_s6 = sshll.u32 %s173_s26, 6 }
  0x2f   : > { %s1895_s9 = scalar_lea.hbm %s2344_s0, %s1423_s5  ;;  %s177_s25 = scalar_lea.vmem [#allocation2], %s1339_s6 }
  0x30   : > { %s184_s28 = sshll.u32 %s177_s25, 4  ;;  %p1897_p11 = pnand %p1454_p6, %p37_p8  ;;  %s1901_s28 = int_to_ptr.vmem [resolvable:$true] %s184_s28 }
  0x31   : > { %s1903_s10 = scalar_lea.sflag [#allocation3], %s173_s26  ;;  %s1654_s11 = scalar_lea.hbm %s1895_s9, 1024 }
  0x32   : > { %p1655_p13 = scmp.ne.s32.totalorder %s1895_s9, %s1654_s11  ;;  %p1656_p0 = pneg %p1897_p11 }
  0x33   : > { %s1659_s5 = scalar_lea.hbm %s2344_s0, 2048  ;;  %p1660_p7 = scmp.lt.u32.totalorder %s1895_s9, %s2344_s0 }
  0x34   : > { %p1657_p3 = pnand %p1656_p0, %p1655_p13  ;;  %p1661_p9 = scmp.lt.u32.totalorder %s1659_s5, %s1654_s11 }
  0x35   : > { %p1663_p2 = scmp.lt.u32.totalorder %s1654_s11, %s1895_s9 }
  0x36   : > { %p1658_p5 = pneg %p1657_p3  ;;  %p1662_p1 = por %p1661_p9, %p1660_p7 }
  0x38   : > { %p1664_p4 = por %p1663_p2, %p1662_p1 }
  0x3a   : > { %p1665_p6 = pnand %p1664_p4, %p1658_p5 }
  0x3c   : > { %1668 = shalt.err (!%p1665_p6)
}
  0x3d   : > { %s1669_s26 = scalar_lea.vmem %s1901_s28, 1024  ;;  %s1759_s8 = smov [#allocation2]  }
  0x3e   : > { %p1670_p8 = scmp.ne.s32.totalorder %s1901_s28, %s1669_s26  ;;  %s1674_s25 = sshll.u32 %s1759_s8, 4  ;;  %s1675_s25 = int_to_ptr.vmem [resolvable:$false] %s1674_s25 }
  0x3f   : > { %s1676_s14 = scalar_lea.vmem %s1675_s25, 2048  ;;  %p1677_p3 = scmp.lt.s32.totalorder %s1901_s28, %s1675_s25 }
  0x40   : > { %p1672_p10 = pnand %p1670_p8, %p1656_p0  ;;  %p1678_p7 = scmp.lt.s32.totalorder %s1676_s14, %s1669_s26 }
  0x42   : > { %p1673_p13 = pneg %p1672_p10  ;;  %p1679_p9 = por %p1678_p7, %p1677_p3 }
  0x44   : > { %p1680_p1 = pnand %p1679_p9, %p1673_p13 }
  0x46   : > { %1683 = shalt.err (!%p1680_p1)
}
  0x47   : > { %1448 = dma.hbm_to_vmem [thread:$0]  (!%p1897_p11), %s1895_s9, 1024, %s1901_s28, %s1903_s10, %s1757_s12, %s1757_s12, %s1758_s13  }
  0x48   : > { %p2359_p0 = scmp.ne.s32.totalorder %s2354_s23, 0 }
  0x49   : > { %s1937_s11 = sand.u32 (!%p2359_p0), 1, %s1746_s16   ;;  %p2360_p5 = scmp.ne.s32.totalorder (!%p2359_p0), %s2352_s21, 0 }
  0x4a   : > { %196 = sbr.rel (%p2359_p0) target bundleno = 910 (0x38e), region = 36  ;;  %s1343_s20 = sshll.u32 (!%p2359_p0), %s1937_s11, 6 }
  0x4b   : > { %s199_s5 = scalar_lea.sflag (!%p2359_p0), [#allocation3], %s1937_s11  ;;  %s1943_s29 = scalar_lea.vmem (!%p2359_p0), [#allocation2], %s1343_s20 }
  0x51   : > { %1729 = dma.done.wait (%p2360_p5), %s199_s5, 1024  }
  0x52   : > { %1731 = vsyncadd (%p2360_p5), %s199_s5, 4294966272  ;;  %p2361_p11 = scmp.eq.s32.totalorder %s1813_s19, 0 }
  0x54   : > { %1733 = dma.done.wait (%p2361_p11), [#allocation6], 8192   ;;  %p2362_p2 = pmov %p2361_p11 }
  0x55   : > { %v1760_v0 = vmov 0   ;;  %v1761_v1 = vmov 1   ;;  %v1955_v2 = vld [vmem:[%s1943_s29 + $0x8] sm:$0xff]  ;;  %v1958_v3 = vld [vmem:[%s1943_s29 + $0x18] sm:$0xff]  ;;  %v1961_v4 = vld [vmem:[%s1943_s29] sm:$0xff]  ;;  %vm272_vm0 = vcmask 261120  }
  0x56   : > { %1735 = vsyncadd (%p2362_p2), [#allocation6], 4294959104  ;;  %317 = vmatprep.mubr.bf16.mxu0 %v1760_v0  ;;  %1498 = vset.pattern.permute.xlu0 %v1761_v1  ;;  %v249_v5 = vpack.c.bf16 %v1958_v3, %v1955_v2  ;;  %v1966_v6 = vld [vmem:[%s1943_s29 + $0x10] sm:$0xff]  ;;  %v237_v7 = vld [vmem:[%s1943_s29 + $0x28] sm:$0xff]  ;;  %s2256_s12 = scalar_lea.vmem [#allocation7], %s1343_s20  ;;  %s1424_s20 = sshll.u32 %s1813_s19, 10 }
  0x57   : > { %1499 = vset.pattern.permute.xlu1 %v1761_v1  ;;  %v239_v8 = vld [vmem:[%s1943_s29 + $0x38] sm:$0xff]  ;;  %v248_v9 = vpack.c.bf16 %v1966_v6, %v1961_v4  ;;  %v236_v11 = vld [vmem:[%s1943_s29 + $0x20] sm:$0xff]  ;;  %v238_v12 = vld [vmem:[%s1943_s29 + $0x30] sm:$0xff]  ;;  %s1252_s13 = sshll.u32 %s2256_s12, 4  ;;  %s2296_s28 = scalar_lea.hbm %s2348_s4, %s1424_s20  ;;  %s2298_s13 = int_to_ptr.vmem [resolvable:$true] %s1252_s13 }
  0x58   : > { %v251_v10 = vpack.c.bf16 %v239_v8, %v237_v7  ;;  %285 = vmatprep.subr.bf16.mxu0 %v249_v5  ;;  %v250_v13 = vpack.c.bf16 %v238_v12, %v236_v11  ;;  %v1977_v14 = vld [vmem:[%s2346_s2] sm:$0xff]  ;;  %v1986_v16 = vld [vmem:[%s2346_s2 + $0x10] sm:$0xff]  ;;  %v1991_v17 = vld [vmem:[%s2346_s2 + $0x8] sm:$0xff]  ;;  %s1239_s10 = scalar_lea.sflag [#allocation4], %s1937_s11  ;;  %s1684_s6 = scalar_lea.vmem %s2298_s13, 1024 }
  0x59   : > { %286 = vmatpush1.bf16.msra.mxu0 %v248_v9  ;;  %v1506_v15 = vld [vmem:[%s2345_s1] sm:$0xff]   ;;  %391 = vperm.xlu0 %1498, %v1977_v14   ;;  %v1997_v18 = vld [vmem:[%s2346_s2 + $0x18] sm:$0xff]  ;;  %v1507_v23 = vld [vmem:[%s2345_s1 + $0x8] sm:$0xff]   ;;  %p1685_p4 = scmp.ne.s32.totalorder %s2298_s13, %s1684_s6 }
  0x5a   : > { %287 = vmatprep.subr.bf16.mxu0 %v251_v10  ;;  %399 = vperm.xlu1 %1499, %v1986_v16   ;;  %v1512_v19 = vld [vmem:[#allocation5 + $0x4] ss:$16 sps:$4 sm:$0xff]   ;;  %v1510_v20 = vld [vmem:[#allocation5] ss:$16 sps:$4 sm:$0xff]   ;;  %v1509_v33 = vld [vmem:[%s2345_s1 + $0x18] sm:$0xff]  }
  0x5b   : > { %v1515_v21 = vld [vmem:[#allocation5 + $0x24] ss:$16 sps:$4 sm:$0xff]   ;;  %932 = vmatprep.subr.bf16.mxu1 %v1512_v19  ;;  %v1513_v22 = vld [vmem:[#allocation5 + $0x20] ss:$16 sps:$4 sm:$0xff]   ;;  %v1560_v54 = vld [vmem:[#allocation5 + $0xc] ss:$16 sps:$4 sm:$0xff]   ;;  %p1686_p6 = pnand %p1685_p4, %p1886_p12 }
  0x5c   : > { %933 = vmatpush1.bf16.msra.mxu1 %v1510_v20  ;;  %v1518_v24 = vld [vmem:[#allocation5 + $0x44] ss:$16 sps:$4 sm:$0xff]   ;;  %v1516_v25 = vld [vmem:[#allocation5 + $0x40] ss:$16 sps:$4 sm:$0xff]  }
  0x5d   : > { %288 = vmatpush1.bf16.msra.mxu0 %v250_v13  ;;  %395 = vperm.xlu0 %1498, %v1991_v17   ;;  %v1521_v26 = vld [vmem:[#allocation5 + $0x64] ss:$16 sps:$4 sm:$0xff]   ;;  %v1519_v27 = vld [vmem:[#allocation5 + $0x60] ss:$16 sps:$4 sm:$0xff]   ;;  %p1687_p8 = pneg %p1686_p6 }
  0x5e   : > { %403 = vperm.xlu1 %1499, %v1997_v18   ;;  %802 = vmatprep.subr.bf16.mxu0 %v1512_v19  ;;  %v1508_v28 = vld [vmem:[%s2345_s1 + $0x10] sm:$0xff]  }
  0x5f   : > { %934 = vmatprep.subr.bf16.mxu1 %v1515_v21  ;;  %v1524_v29 = vld [vmem:[#allocation5 + $0x84] ss:$16 sps:$4 sm:$0xff]   ;;  %v1522_v30 = vld [vmem:[#allocation5 + $0x80] ss:$16 sps:$4 sm:$0xff]  }
  0x60   : > { %1350 = vmatmul.mubr.msk.bf16.vlgmr.msra.gmra.mrb[0].mxu0 %vm272_vm0, %v1506_v15  ;;  %935 = vmatpush1.bf16.msra.mxu1 %v1513_v22  ;;  %v1527_v31 = vld [vmem:[#allocation5 + $0xa4] ss:$16 sps:$4 sm:$0xff]   ;;  %v1525_v32 = vld [vmem:[#allocation5 + $0xa0] ss:$16 sps:$4 sm:$0xff]  }
  0x61   : > { %327 = vmatprep.mubr.bf16.mxu0 %v1760_v0  ;;  %803 = vmatpush1.bf16.msra.mxu0 %v1510_v20  ;;  %v1530_v34 = vld [vmem:[#allocation5 + $0xc4] ss:$16 sps:$4 sm:$0xff]   ;;  %v1528_v35 = vld [vmem:[#allocation5 + $0xc0] ss:$16 sps:$4 sm:$0xff]   ;;  %v2041_v20 = vld [vmem:[#allocation5 + $0x8] ss:$16 sps:$4 sm:$0xff]  }
  0x62   : > { %1500 = vset.pattern.permute.xlu0 %v1760_v0  ;;  %804 = vmatprep.subr.bf16.mxu0 %v1515_v21  ;;  %v1533_v36 = vld [vmem:[#allocation5 + $0xe4] ss:$16 sps:$4 sm:$0xff]   ;;  %v1531_v37 = vld [vmem:[#allocation5 + $0xe0] ss:$16 sps:$4 sm:$0xff]   ;;  %v2043_v21 = vld [vmem:[#allocation5 + $0x2c] ss:$16 sps:$4 sm:$0xff]  }
  0x63   : > { %364 = vperm.xlu0 %1500, %v1977_v14   ;;  %1501 = vset.pattern.permute.xlu1 %v1760_v0  ;;  %v1536_v38 = vld [vmem:[#allocation5 + $0x104] ss:$16 sps:$4 sm:$0xff]   ;;  %v1534_v39 = vld [vmem:[#allocation5 + $0x100] ss:$16 sps:$4 sm:$0xff]  }
  0x64   : > { %369 = vperm.xlu1 %1501, %v1991_v17   ;;  %936 = vmatprep.subr.bf16.mxu1 %v1518_v24  ;;  %v1539_v40 = vld [vmem:[#allocation5 + $0x124] ss:$16 sps:$4 sm:$0xff]   ;;  %v1537_v41 = vld [vmem:[#allocation5 + $0x120] ss:$16 sps:$4 sm:$0xff]  }
  0x65   : > { %805 = vmatpush1.bf16.msra.mxu0 %v1513_v22  ;;  %937 = vmatpush1.bf16.msra.mxu1 %v1516_v25  ;;  %v1542_v42 = vld [vmem:[#allocation5 + $0x144] ss:$16 sps:$4 sm:$0xff]   ;;  %v1540_v43 = vld [vmem:[#allocation5 + $0x140] ss:$16 sps:$4 sm:$0xff]  }
  0x66   : > { %806 = vmatprep.subr.bf16.mxu0 %v1518_v24  ;;  %938 = vmatprep.subr.bf16.mxu1 %v1521_v26  ;;  %v1545_v44 = vld [vmem:[#allocation5 + $0x164] ss:$16 sps:$4 sm:$0xff]   ;;  %v1543_v45 = vld [vmem:[#allocation5 + $0x160] ss:$16 sps:$4 sm:$0xff]  }
  0x67   : > { %379 = vperm.xlu0 %1500, %v1997_v18   ;;  %v1548_v46 = vld [vmem:[#allocation5 + $0x184] ss:$16 sps:$4 sm:$0xff]   ;;  %v1546_v47 = vld [vmem:[#allocation5 + $0x180] ss:$16 sps:$4 sm:$0xff]  }
  0x68   : > { %1351 = vmatmul.mubr.msk.bf16.gmra.mrb[4].mxu0 %vm272_vm0, %v1507_v23  ;;  %374 = vperm.xlu1 %1501, %v1986_v16   ;;  %v1551_v48 = vld [vmem:[#allocation5 + $0x1a4] ss:$16 sps:$4 sm:$0xff]   ;;  %v1549_v49 = vld [vmem:[#allocation5 + $0x1a0] ss:$16 sps:$4 sm:$0xff]  }
  0x69   : > { %337 = vmatprep.mubr.bf16.mxu0 %v1760_v0  ;;  %807 = vmatpush1.bf16.msra.mxu0 %v1516_v25  ;;  %v1554_v50 = vld [vmem:[#allocation5 + $0x1c4] ss:$16 sps:$4 sm:$0xff]   ;;  %v1552_v51 = vld [vmem:[#allocation5 + $0x1c0] ss:$16 sps:$4 sm:$0xff]  }
  0x6a   : > { %808 = vmatprep.subr.bf16.mxu0 %v1521_v26  ;;  %939 = vmatpush1.bf16.msra.mxu1 %v1519_v27  ;;  %v1557_v52 = vld [vmem:[#allocation5 + $0x1e4] ss:$16 sps:$4 sm:$0xff]   ;;  %v1555_v53 = vld [vmem:[#allocation5 + $0x1e0] ss:$16 sps:$4 sm:$0xff]  }
  0x6b   : > { %940 = vmatprep.subr.bf16.mxu1 %v1524_v29 }
  0x6d   : > { %809 = vmatpush1.bf16.msra.mxu0 %v1519_v27 }
  0x6e   : > { %810 = vmatprep.subr.bf16.mxu0 %v1524_v29  ;;  %941 = vmatpush1.bf16.msra.mxu1 %v1522_v30 }
  0x6f   : > { %942 = vmatprep.subr.bf16.mxu1 %v1527_v31 }
  0x70   : > { %1352 = vmatmul.mubr.msk.bf16.gmra.mrb[8].mxu0 %vm272_vm0, %v1508_v28  ;;  %v2047_v28 = vld [vmem:[#allocation5 + $0x28] ss:$16 sps:$4 sm:$0xff]  }
  0x71   : > { %347 = vmatprep.mubr.bf16.mxu0 %v1760_v0  ;;  %811 = vmatpush1.bf16.msra.mxu0 %v1522_v30 }
  0x72   : > { %812 = vmatprep.subr.bf16.mxu0 %v1527_v31  ;;  %943 = vmatpush1.bf16.msra.mxu1 %v1525_v32  ;;  %v2050_v31 = vld [vmem:[#allocation5 + $0x4c] ss:$16 sps:$4 sm:$0xff]  }
  0x73   : > { %944 = vmatprep.subr.bf16.mxu1 %v1530_v34 }
  0x75   : > { %813 = vmatpush1.bf16.msra.mxu0 %v1525_v32 }
  0x76   : > { %814 = vmatprep.subr.bf16.mxu0 %v1530_v34  ;;  %945 = vmatpush1.bf16.msra.mxu1 %v1528_v35 }
  0x77   : > { %946 = vmatprep.subr.bf16.mxu1 %v1533_v36 }
  0x78   : > { %1353 = vmatmul.mubr.msk.bf16.gmra.mrb[12].mxu0 %vm272_vm0, %v1509_v33 }
  0x79   : > { %815 = vmatpush1.bf16.msra.mxu0 %v1528_v35  ;;  %v2053_v35 = vld [vmem:[#allocation5 + $0x48] ss:$16 sps:$4 sm:$0xff]  }
  0x7a   : > { %816 = vmatprep.subr.bf16.mxu0 %v1533_v36  ;;  %947 = vmatpush1.bf16.msra.mxu1 %v1531_v37  ;;  %v2056_v36 = vld [vmem:[#allocation5 + $0x6c] ss:$16 sps:$4 sm:$0xff]  }
  0x7b   : > { %948 = vmatprep.subr.bf16.mxu1 %v1536_v38 }
  0x7d   : > { %817 = vmatpush1.bf16.msra.mxu0 %v1531_v37  ;;  %v2059_v37 = vld [vmem:[#allocation5 + $0x68] ss:$16 sps:$4 sm:$0xff]  }
  0x7e   : > { %818 = vmatprep.subr.bf16.mxu0 %v1536_v38  ;;  %949 = vmatpush1.bf16.msra.mxu1 %v1534_v39  ;;  %v2062_v38 = vld [vmem:[#allocation5 + $0x8c] ss:$16 sps:$4 sm:$0xff]  }
  0x7f   : > { %950 = vmatprep.subr.bf16.mxu1 %v1539_v40 }
  0x81   : > { %819 = vmatpush1.bf16.msra.mxu0 %v1534_v39  ;;  %v2065_v39 = vld [vmem:[#allocation5 + $0x88] ss:$16 sps:$4 sm:$0xff]  }
  0x82   : > { %820 = vmatprep.subr.bf16.mxu0 %v1539_v40  ;;  %951 = vmatpush1.bf16.msra.mxu1 %v1537_v41  ;;  %v2068_v40 = vld [vmem:[#allocation5 + $0xac] ss:$16 sps:$4 sm:$0xff]  }
  0x83   : > { %952 = vmatprep.subr.bf16.mxu1 %v1542_v42 }
  0x85   : > { %821 = vmatpush1.bf16.msra.mxu0 %v1537_v41  ;;  %v2071_v41 = vld [vmem:[#allocation5 + $0xa8] ss:$16 sps:$4 sm:$0xff]  }
  0x86   : > { %822 = vmatprep.subr.bf16.mxu0 %v1542_v42  ;;  %953 = vmatpush1.bf16.msra.mxu1 %v1540_v43  ;;  %v2074_v42 = vld [vmem:[#allocation5 + $0xcc] ss:$16 sps:$4 sm:$0xff]  }
  0x87   : > { %954 = vmatprep.subr.bf16.mxu1 %v1545_v44 }
  0x89   : > { %823 = vmatpush1.bf16.msra.mxu0 %v1540_v43  ;;  %v2077_v43 = vld [vmem:[#allocation5 + $0xc8] ss:$16 sps:$4 sm:$0xff]  }
  0x8a   : > { %824 = vmatprep.subr.bf16.mxu0 %v1545_v44  ;;  %955 = vmatpush1.bf16.msra.mxu1 %v1543_v45  ;;  %v2080_v44 = vld [vmem:[#allocation5 + $0xec] ss:$16 sps:$4 sm:$0xff]  }
  0x8b   : > { %956 = vmatprep.subr.bf16.mxu1 %v1548_v46 }
  0x8d   : > { %825 = vmatpush1.bf16.msra.mxu0 %v1543_v45  ;;  %v2083_v45 = vld [vmem:[#allocation5 + $0xe8] ss:$16 sps:$4 sm:$0xff]  }
  0x8e   : > { %826 = vmatprep.subr.bf16.mxu0 %v1548_v46  ;;  %957 = vmatpush1.bf16.msra.mxu1 %v1546_v47  ;;  %v2086_v46 = vld [vmem:[#allocation5 + $0x10c] ss:$16 sps:$4 sm:$0xff]  }
  0x8f   : > { %958 = vmatprep.subr.bf16.mxu1 %v1551_v48 }
  0x91   : > { %827 = vmatpush1.bf16.msra.mxu0 %v1546_v47  ;;  %v2089_v47 = vld [vmem:[#allocation5 + $0x108] ss:$16 sps:$4 sm:$0xff]  }
  0x92   : > { %828 = vmatprep.subr.bf16.mxu0 %v1551_v48  ;;  %959 = vmatpush1.bf16.msra.mxu1 %v1549_v49  ;;  %v2092_v48 = vld [vmem:[#allocation5 + $0x12c] ss:$16 sps:$4 sm:$0xff]  }
  0x93   : > { %960 = vmatprep.subr.bf16.mxu1 %v1554_v50 }
  0x95   : > { %829 = vmatpush1.bf16.msra.mxu0 %v1549_v49  ;;  %v2095_v49 = vld [vmem:[#allocation5 + $0x128] ss:$16 sps:$4 sm:$0xff]  }
  0x96   : > { %830 = vmatprep.subr.bf16.mxu0 %v1554_v50  ;;  %961 = vmatpush1.bf16.msra.mxu1 %v1552_v51  ;;  %v2098_v50 = vld [vmem:[#allocation5 + $0x14c] ss:$16 sps:$4 sm:$0xff]  }
  0x97   : > { %962 = vmatprep.subr.bf16.mxu1 %v1557_v52 }
  0x99   : > { %831 = vmatpush1.bf16.msra.mxu0 %v1552_v51  ;;  %v2101_v51 = vld [vmem:[#allocation5 + $0x148] ss:$16 sps:$4 sm:$0xff]  }
  0x9a   : > { %832 = vmatprep.subr.bf16.mxu0 %v1557_v52  ;;  %963 = vmatpush1.bf16.msra.mxu1 %v1555_v53  ;;  %v2104_v52 = vld [vmem:[#allocation5 + $0x16c] ss:$16 sps:$4 sm:$0xff]  }
  0x9b   : > { %1005 = vmatprep.subr.bf16.mxu1 %v1560_v54 }
  0x9d   : > { %833 = vmatpush1.bf16.msra.mxu0 %v1555_v53  ;;  %v2107_v53 = vld [vmem:[#allocation5 + $0x168] ss:$16 sps:$4 sm:$0xff]  }
  0x9e   : > { %855 = vmatprep.subr.bf16.mxu0 %v1560_v54  ;;  %v2110_v54 = vld [vmem:[#allocation5 + $0x18c] ss:$16 sps:$4 sm:$0xff]  }
  0xd8   : > { %v392_v63 = vpop.permute.xlu0 %391 }
  0xd9   : > { %v400_v11 = vpop.permute.xlu1 %399 }
  0xdc   : > { %v396_v5 = vpop.permute.xlu0 %395 }
  0xdd   : > { %v404_v25 = vpop.permute.xlu1 %403 }
 0x133   : > { %v2023_v55 = vpop.f32.mrb[0].mxu0 }
 0x134   : > { %v2025_v56 = vpop.f32.mrb[1].mxu0 }
 0x135   : > { %v2027_v57 = vpop.f32.mrb[2].mxu0 }
 0x136   : > { %v2029_v58 = vpop.f32.mrb[3].mxu0 }
 0x13b   : > { %v2031_v59 = vpop.f32.mrb[4].mxu0 }
 0x13c   : > { %v2033_v60 = vpop.f32.mrb[5].mxu0 }
 0x13d   : > { %v2035_v61 = vpop.f32.mrb[6].mxu0 }
 0x13e   : > { %v2037_v62 = vpop.f32.mrb[7].mxu0 }
 0x143   : > { %v339_v0 = vpop.f32.mrb[8].mxu0 }
 0x144   : > { %v341_v1 = vpop.f32.mrb[9].mxu0  ;;  %v406_v8 = vadd.f32 %v392_v63, %v339_v0  ;;  %v2116_v0 = vld [vmem:[#allocation5 + $0x1ac] ss:$16 sps:$4 sm:$0xff]  }
 0x145   : > { %v343_v7 = vpop.f32.mrb[10].mxu0  ;;  %v407_v12 = vadd.f32 %v392_v63, %v341_v1  ;;  %v2113_v63 = vld [vmem:[#allocation5 + $0x188] ss:$16 sps:$4 sm:$0xff]  }
 0x146   : > { %v408_v9 = vadd.f32 %v396_v5, %v343_v7  ;;  %v345_v10 = vpop.f32.mrb[11].mxu0  ;;  %v2119_v1 = vld [vmem:[#allocation5 + $0x1a8] ss:$16 sps:$4 sm:$0xff]  }
 0x147   : > { %v409_v13 = vadd.f32 %v396_v5, %v345_v10  ;;  %v2122_v5 = vld [vmem:[#allocation5 + $0x1cc] ss:$16 sps:$4 sm:$0xff]   ;;  %v2125_v7 = vld [vmem:[#allocation5 + $0x1c8] ss:$16 sps:$4 sm:$0xff]   ;;  %v1762_v10 = vmov 2  }
 0x148   : > { %v2039_v15 = vpack.c.bf16 %v408_v9, %v406_v8  ;;  %v2128_v8 = vld [vmem:[#allocation5 + $0x1ec] ss:$16 sps:$4 sm:$0xff]   ;;  %v2131_v9 = vld [vmem:[#allocation5 + $0x1e8] ss:$16 sps:$4 sm:$0xff]   ;;  %1502 = vset.pattern.permute.xlu1 %v1762_v10  ;;  %1503 = vset.pattern.permute.xlu0 %v1762_v10 }
 0x149   : > { %v479_v19 = vpack.c.bf16 %v409_v13, %v407_v12  ;;  %1175 = vperm.xlu1 %1502, %v1977_v14   ;;  %1179 = vperm.xlu0 %1503, %v1991_v17   ;;  %v365_v12 = vpop.permute.xlu0 %364  ;;  %v370_v13 = vpop.permute.xlu1 %369 }
 0x14b   : > { %v349_v22 = vpop.f32.mrb[12].mxu0  ;;  %834 = vmatprep.mubr.bf16.mxu0 %v479_v19 }
 0x14c   : > { %v410_v23 = vadd.f32 %v400_v11, %v349_v22  ;;  %v351_v24 = vpop.f32.mrb[13].mxu0  ;;  %835 = vmatmul.mubr.bf16.vlgmr.msra.gmra.mrb[16].mxu0 %v2039_v15 }
 0x14d   : > { %v411_v26 = vadd.f32 %v400_v11, %v351_v24  ;;  %856 = vmatpush1.bf16.msra.mxu0 %v2041_v20  ;;  %v353_v27 = vpop.f32.mrb[14].mxu0  ;;  %1183 = vperm.xlu1 %1502, %v1986_v16   ;;  %v1763_v11 = vmov 3  }
 0x14e   : > { %v412_v29 = vadd.f32 %v404_v25, %v353_v27  ;;  %v355_v30 = vpop.f32.mrb[15].mxu0  ;;  %857 = vmatprep.subr.bf16.mxu0 %v2043_v21  ;;  %1504 = vset.pattern.permute.xlu0 %v1763_v11 }
 0x14f   : > { %v413_v32 = vadd.f32 %v404_v25, %v355_v30  ;;  %1199 = vperm.xlu0 %1504, %v1977_v14   ;;  %v2154_v25 = vadd.f32 %v370_v13, %v2029_v58 }
 0x150   : > { %v480_v33 = vpack.c.bf16 %v412_v29, %v410_v23  ;;  %v2150_v23 = vadd.f32 %v370_v13, %v2027_v57  ;;  %v380_v57 = vpop.permute.xlu0 %379 }
 0x151   : > { %v481_v34 = vpack.c.bf16 %v413_v32, %v411_v26  ;;  %858 = vmatpush1.bf16.msra.mxu0 %v2047_v28  ;;  %1187 = vperm.xlu1 %1502, %v1997_v18  }
 0x152   : > { %859 = vmatprep.subr.bf16.mxu0 %v2050_v31 }
 0x153   : > { %844 = vmatprep.mubr.bf16.mxu0 %v481_v34  ;;  %1211 = vperm.xlu0 %1504, %v1997_v18  }
 0x154   : > { %845 = vmatmul.mubr.bf16.gmra.mrb[20].mxu0 %v480_v33 }
 0x155   : > { %860 = vmatpush1.bf16.msra.mxu0 %v2053_v35  ;;  %887 = vmatprep.mubr.bf16.mxu0 %v479_v19  ;;  %v2146_v19 = vadd.f32 %v365_v12, %v2025_v56  ;;  %v375_v56 = vpop.permute.xlu1 %374 }
 0x156   : > { %861 = vmatprep.subr.bf16.mxu0 %v2056_v36  ;;  %1505 = vset.pattern.permute.xlu1 %v1763_v11  ;;  %v386_v32 = vadd.f32 %v375_v56, %v2031_v59  ;;  %v2166_v58 = vadd.f32 %v375_v56, %v2033_v60 }
 0x157   : > { %1203 = vperm.xlu1 %1505, %v1991_v17  }
 0x159   : > { %862 = vmatpush1.bf16.msra.mxu0 %v2059_v37 }
 0x15a   : > { %863 = vmatprep.subr.bf16.mxu0 %v2062_v38 }
 0x15b   : > { %1207 = vperm.xlu1 %1505, %v1986_v16   ;;  %v389_v16 = vadd.f32 %v380_v57, %v2037_v62 }
 0x15d   : > { %864 = vmatpush1.bf16.msra.mxu0 %v2065_v39 }
 0x15e   : > { %865 = vmatprep.subr.bf16.mxu0 %v2068_v40 }
 0x161   : > { %866 = vmatpush1.bf16.msra.mxu0 %v2071_v41 }
 0x162   : > { %867 = vmatprep.subr.bf16.mxu0 %v2074_v42 }
 0x165   : > { %868 = vmatpush1.bf16.msra.mxu0 %v2077_v43 }
 0x166   : > { %869 = vmatprep.subr.bf16.mxu0 %v2080_v44 }
 0x169   : > { %870 = vmatpush1.bf16.msra.mxu0 %v2083_v45 }
 0x16a   : > { %871 = vmatprep.subr.bf16.mxu0 %v2086_v46 }
 0x16d   : > { %872 = vmatpush1.bf16.msra.mxu0 %v2089_v47 }
 0x16e   : > { %873 = vmatprep.subr.bf16.mxu0 %v2092_v48 }
 0x171   : > { %874 = vmatpush1.bf16.msra.mxu0 %v2095_v49 }
 0x172   : > { %875 = vmatprep.subr.bf16.mxu0 %v2098_v50 }
 0x175   : > { %876 = vmatpush1.bf16.msra.mxu0 %v2101_v51 }
 0x176   : > { %877 = vmatprep.subr.bf16.mxu0 %v2104_v52 }
 0x179   : > { %878 = vmatpush1.bf16.msra.mxu0 %v2107_v53 }
 0x17a   : > { %879 = vmatprep.subr.bf16.mxu0 %v2110_v54 }
 0x17d   : > { %880 = vmatpush1.bf16.msra.mxu0 %v2113_v63 }
 0x17e   : > { %881 = vmatprep.subr.bf16.mxu0 %v2116_v0 }
 0x181   : > { %882 = vmatpush1.bf16.msra.mxu0 %v2119_v1 }
 0x182   : > { %883 = vmatprep.subr.bf16.mxu0 %v2122_v5 }
 0x185   : > { %884 = vmatpush1.bf16.msra.mxu0 %v2125_v7 }
 0x186   : > { %885 = vmatprep.subr.bf16.mxu0 %v2128_v8 }
 0x189   : > { %886 = vmatpush1.bf16.msra.mxu0 %v2131_v9 }
 0x18c   : > { %888 = vmatmul.mubr.bf16.vlgmr.msra.gmra.mrb[24].mxu0 %v2039_v15  ;;  %v2143_v15 = vadd.f32 %v365_v12, %v2023_v55 }
 0x18d   : > { %897 = vmatprep.mubr.bf16.mxu0 %v481_v34  ;;  %v388_v34 = vadd.f32 %v380_v57, %v2035_v61 }
 0x194   : > { %898 = vmatmul.mubr.bf16.gmra.mrb[28].mxu0 %v480_v33 }
 0x21f   : > { %v836_v22 = vpop.f32.mrb[16].mxu0 }
 0x220   : > { %v908_v14 = vmul.f32 %v836_v22, %v2143_v15  ;;  %v838_v24 = vpop.f32.mrb[17].mxu0 }
 0x221   : > { %v909_v18 = vmul.f32 %v838_v24, %v2146_v19  ;;  %v840_v55 = vpop.f32.mrb[18].mxu0 }
 0x222   : > { %v910_v26 = vmul.f32 %v840_v55, %v2150_v23  ;;  %v842_v27 = vpop.f32.mrb[19].mxu0 }
 0x223   : > { %v911_v29 = vmul.f32 %v842_v27, %v2154_v25 }
 0x224   : > { %v2160_v17 = vpack.c.bf16 %v910_v26, %v908_v14 }
 0x225   : > { %v2162_v30 = vpack.c.bf16 %v911_v29, %v909_v18 }
 0x227   : > { %v846_v33 = vpop.f32.mrb[20].mxu0  ;;  %964 = vmatprep.mubr.bf16.mxu1 %v2162_v30 }
 0x228   : > { %v912_v10 = vmul.f32 %v846_v33, %v386_v32  ;;  %v848_v11 = vpop.f32.mrb[21].mxu0  ;;  %965 = vmatmul.mubr.bf16.vlgmr.msra.gmra.mrb[0].mxu1 %v2160_v17 }
 0x229   : > { %v913_v12 = vmul.f32 %v848_v11, %v2166_v58  ;;  %v850_v13 = vpop.f32.mrb[22].mxu0  ;;  %1006 = vmatpush1.bf16.msra.mxu1 %v2041_v20 }
 0x22a   : > { %v914_v59 = vmul.f32 %v850_v13, %v388_v34  ;;  %v852_v22 = vpop.f32.mrb[23].mxu0  ;;  %1007 = vmatprep.subr.bf16.mxu1 %v2043_v21 }
 0x22b   : > { %v915_v60 = vmul.f32 %v852_v22, %v389_v16 }
 0x22c   : > { %v926_v14 = vpack.c.bf16 %v914_v59, %v912_v10 }
 0x22d   : > { %v927_v24 = vpack.c.bf16 %v915_v60, %v913_v12  ;;  %1008 = vmatpush1.bf16.msra.mxu1 %v2047_v28 }
 0x22e   : > { %1009 = vmatprep.subr.bf16.mxu1 %v2050_v31 }
 0x22f   : > { %974 = vmatprep.mubr.bf16.mxu1 %v927_v24 }
 0x230   : > { %975 = vmatmul.mubr.bf16.gmra.mrb[4].mxu1 %v926_v14 }
 0x231   : > { %1010 = vmatpush1.bf16.msra.mxu1 %v2053_v35 }
 0x232   : > { %1011 = vmatprep.subr.bf16.mxu1 %v2056_v36 }
 0x235   : > { %1012 = vmatpush1.bf16.msra.mxu1 %v2059_v37 }
 0x236   : > { %1013 = vmatprep.subr.bf16.mxu1 %v2062_v38 }
 0x239   : > { %1014 = vmatpush1.bf16.msra.mxu1 %v2065_v39 }
 0x23a   : > { %1015 = vmatprep.subr.bf16.mxu1 %v2068_v40 }
 0x23d   : > { %1016 = vmatpush1.bf16.msra.mxu1 %v2071_v41 }
 0x23e   : > { %1017 = vmatprep.subr.bf16.mxu1 %v2074_v42 }
 0x241   : > { %1018 = vmatpush1.bf16.msra.mxu1 %v2077_v43 }
 0x242   : > { %1019 = vmatprep.subr.bf16.mxu1 %v2080_v44 }
 0x245   : > { %1020 = vmatpush1.bf16.msra.mxu1 %v2083_v45 }
 0x246   : > { %1021 = vmatprep.subr.bf16.mxu1 %v2086_v46 }
 0x249   : > { %1022 = vmatpush1.bf16.msra.mxu1 %v2089_v47 }
 0x24a   : > { %1023 = vmatprep.subr.bf16.mxu1 %v2092_v48 }
 0x24d   : > { %1024 = vmatpush1.bf16.msra.mxu1 %v2095_v49 }
 0x24e   : > { %1025 = vmatprep.subr.bf16.mxu1 %v2098_v50 }
 0x251   : > { %1026 = vmatpush1.bf16.msra.mxu1 %v2101_v51 }
 0x252   : > { %1027 = vmatprep.subr.bf16.mxu1 %v2104_v52 }
 0x255   : > { %1028 = vmatpush1.bf16.msra.mxu1 %v2107_v53 }
 0x256   : > { %1029 = vmatprep.subr.bf16.mxu1 %v2110_v54 }
 0x259   : > { %1030 = vmatpush1.bf16.msra.mxu1 %v2113_v63 }
 0x25a   : > { %1031 = vmatprep.subr.bf16.mxu1 %v2116_v0 }
 0x25d   : > { %1032 = vmatpush1.bf16.msra.mxu1 %v2119_v1 }
 0x25e   : > { %1033 = vmatprep.subr.bf16.mxu1 %v2122_v5 }
 0x25f   : > { %v889_v61 = vpop.f32.mrb[24].mxu0 }
 0x260   : > { %v916_v62 = vmul.f32 %v889_v61, %v2143_v15  ;;  %v891_v20 = vpop.f32.mrb[25].mxu0  ;;  %v2215_v61 = vpop.permute.xlu0 %1179 }
 0x261   : > { %v917_v21 = vmul.f32 %v891_v20, %v2146_v19  ;;  %v893_v28 = vpop.f32.mrb[26].mxu0  ;;  %1034 = vmatpush1.bf16.msra.mxu1 %v2125_v7 }
 0x262   : > { %v918_v31 = vmul.f32 %v893_v28, %v2150_v23  ;;  %v895_v35 = vpop.f32.mrb[27].mxu0  ;;  %1035 = vmatprep.subr.bf16.mxu1 %v2128_v8 }
 0x263   : > { %v919_v36 = vmul.f32 %v895_v35, %v2154_v25 }
 0x264   : > { %v928_v37 = vpack.c.bf16 %v918_v31, %v916_v62 }
 0x265   : > { %v929_v38 = vpack.c.bf16 %v919_v36, %v917_v21  ;;  %1036 = vmatpush1.bf16.msra.mxu1 %v2131_v9 }
 0x267   : > { %v899_v39 = vpop.f32.mrb[28].mxu0  ;;  %984 = vmatprep.mubr.bf16.mxu1 %v929_v38 }
 0x268   : > { %v920_v40 = vmul.f32 %v899_v39, %v386_v32  ;;  %v901_v41 = vpop.f32.mrb[29].mxu0  ;;  %985 = vmatmul.mubr.bf16.gmra.mrb[8].mxu1 %v928_v37 }
 0x269   : > { %v921_v42 = vmul.f32 %v901_v41, %v2166_v58  ;;  %v903_v43 = vpop.f32.mrb[30].mxu0 }
 0x26a   : > { %v922_v44 = vmul.f32 %v903_v43, %v388_v34  ;;  %v905_v45 = vpop.f32.mrb[31].mxu0 }
 0x26b   : > { %v923_v46 = vmul.f32 %v905_v45, %v389_v16 }
 0x26c   : > { %v930_v47 = vpack.c.bf16 %v922_v44, %v920_v40  ;;  %v1200_v40 = vpop.permute.xlu0 %1199 }
 0x26d   : > { %v931_v48 = vpack.c.bf16 %v923_v46, %v921_v42 }
 0x26f   : > { %994 = vmatprep.mubr.bf16.mxu1 %v931_v48 }
 0x270   : > { %995 = vmatmul.mubr.bf16.gmra.mrb[12].mxu1 %v930_v47 }
 0x271   : > { %1037 = vmatprep.mubr.bf16.mxu1 %v2162_v30 }
 0x278   : > { %1038 = vmatmul.mubr.bf16.vlgmr.msra.gmra.mrb[16].mxu1 %v2160_v17  ;;  %v2211_v17 = vpop.permute.xlu1 %1175 }
 0x279   : > { %1047 = vmatprep.mubr.bf16.mxu1 %v927_v24 }
 0x27c   : > { %v2213_v34 = vpop.permute.xlu1 %1183 }
 0x280   : > { %1048 = vmatmul.mubr.bf16.gmra.mrb[20].mxu1 %v926_v14  ;;  %v2219_v21 = vpop.permute.xlu1 %1187 }
 0x281   : > { %1057 = vmatprep.mubr.bf16.mxu1 %v929_v38 }
 0x284   : > { %v1204_v44 = vpop.permute.xlu1 %1203 }
 0x288   : > { %1058 = vmatmul.mubr.bf16.gmra.mrb[0].mxu1 %v928_v37 }
 0x289   : > { %1067 = vmatprep.mubr.bf16.mxu1 %v931_v48 }
 0x290   : > { %1068 = vmatmul.mubr.bf16.gmra.mrb[4].mxu1 %v930_v47 }
 0x33b   : > { %v986_v49 = vpop.f32.mrb[8].mxu1 }
 0x33c   : > { %v988_v50 = vpop.f32.mrb[9].mxu1 }
 0x33d   : > { %v990_v51 = vpop.f32.mrb[10].mxu1 }
 0x33e   : > { %v992_v52 = vpop.f32.mrb[11].mxu1 }
 0x343   : > { %v996_v53 = vpop.f32.mrb[12].mxu1 }
 0x344   : > { %v998_v54 = vpop.f32.mrb[13].mxu1 }
 0x345   : > { %v1000_v63 = vpop.f32.mrb[14].mxu1 }
 0x346   : > { %v1002_v0 = vpop.f32.mrb[15].mxu1 }
 0x34b   : > { %v1039_v1 = vpop.f32.mrb[16].mxu1 }
 0x34c   : > { %v1086_v5 = vsub.f32 %v986_v49, %v1039_v1  ;;  %v1041_v7 = vpop.f32.mrb[17].mxu1  ;;  %v1214_v49 = vmul.f32 %v1200_v40, %v1961_v4 }
 0x34d   : > { %v1087_v8 = vsub.f32 %v988_v50, %v1041_v7  ;;  %v1043_v9 = vpop.f32.mrb[18].mxu1  ;;  %v1215_v50 = vmul.f32 %v1200_v40, %v1955_v2 }
 0x34e   : > { %v1088_v15 = vsub.f32 %v990_v51, %v1043_v9  ;;  %v1045_v19 = vpop.f32.mrb[19].mxu1  ;;  %v1102_v32 = vmul.f32 %v1086_v5, %v1086_v5 }
 0x34f   : > { %v1089_v23 = vsub.f32 %v992_v52, %v1045_v19  ;;  %v1103_v10 = vmul.f32 %v1087_v8, %v1087_v8 }
 0x350   : > { %v1104_v12 = vmul.f32 %v1088_v15, %v1088_v15 }
 0x351   : > { %v1105_v60 = vmul.f32 %v1089_v23, %v1089_v23 }
 0x353   : > { %v1049_v25 = vpop.f32.mrb[20].mxu1 }
 0x354   : > { %v1090_v18 = vsub.f32 %v996_v53, %v1049_v25  ;;  %v1051_v55 = vpop.f32.mrb[21].mxu1  ;;  %v1216_v53 = vmul.f32 %v1204_v44, %v1966_v6 }
 0x355   : > { %v1091_v26 = vsub.f32 %v998_v54, %v1051_v55  ;;  %v1053_v27 = vpop.f32.mrb[22].mxu1 }
 0x356   : > { %v1092_v56 = vsub.f32 %v1000_v63, %v1053_v27  ;;  %v1055_v29 = vpop.f32.mrb[23].mxu1  ;;  %v1106_v31 = vmul.f32 %v1090_v18, %v1090_v18  ;;  %v1208_v27 = vpop.permute.xlu1 %1207 }
 0x357   : > { %v1093_v57 = vsub.f32 %v1002_v0, %v1055_v29  ;;  %v1107_v37 = vmul.f32 %v1091_v26, %v1091_v26  ;;  %v1217_v0 = vmul.f32 %v1204_v44, %v1958_v3 }
 0x358   : > { %v1108_v45 = vmul.f32 %v1092_v56, %v1092_v56 }
 0x359   : > { %v1109_v46 = vmul.f32 %v1093_v57, %v1093_v57 }
 0x35b   : > { %v1059_v30 = vpop.f32.mrb[0].mxu1 }
 0x35c   : > { %v1094_v58 = vmul.f32 %v1059_v30, %v1059_v30  ;;  %v1061_v33 = vpop.f32.mrb[1].mxu1 }
 0x35d   : > { %v1095_v11 = vmul.f32 %v1061_v33, %v1061_v33  ;;  %v1063_v16 = vpop.f32.mrb[2].mxu1 }
 0x35e   : > { %v1110_v13 = vadd.f32 %v1102_v32, %v1094_v58  ;;  %v1096_v59 = vmul.f32 %v1063_v16, %v1063_v16  ;;  %v1065_v22 = vpop.f32.mrb[3].mxu1  ;;  %v1622_v16 = vld [vmem:[%s1943_s29 + $0x20] sm:$0xff] }
 0x35f   : > { %v1111_v14 = vadd.f32 %v1103_v10, %v1095_v11  ;;  %v1097_v24 = vmul.f32 %v1065_v22, %v1065_v22 }
 0x360   : > { %v1112_v62 = vadd.f32 %v1104_v12, %v1096_v59  ;;  %1606 = vrsqrt.f32 %v1110_v13  ;;  %vm1120_vm1 = vcmp.eq.f32.partialorder %v1110_v13, inf  ;;  %vm1122_vm2 = vcmp.eq.f32.partialorder %v1110_v13, 0.0 }
 0x361   : > { %v2217_v20 = vadd.f32 %v1105_v60, %v1097_v24  ;;  %1608 = vrsqrt.f32 %v1111_v14  ;;  %v1123_v63 = vand.u32 2147483648, %v1110_v13  ;;  %vm1127_vm3 = vcmp.eq.f32.partialorder %v1111_v14, inf }
 0x362   : > { %1610 = vrsqrt.f32 %v1112_v62  ;;  %vm1129_vm4 = vcmp.eq.f32.partialorder %v1111_v14, 0.0  ;;  %v1130_v7 = vand.u32 2147483648, %v1111_v14  ;;  %vm1134_vm5 = vcmp.eq.f32.partialorder %v1112_v62, inf }
 0x363   : > { %v1069_v28 = vpop.f32.mrb[4].mxu1  ;;  %1612 = vrsqrt.f32 %v2217_v20  ;;  %vm1136_vm6 = vcmp.eq.f32.partialorder %v1112_v62, 0.0  ;;  %v1137_v15 = vand.u32 2147483648, %v1112_v62  ;;  %vm1141_vm7 = vcmp.eq.f32.partialorder %v2217_v20, inf }
 0x364   : > { %v1098_v35 = vmul.f32 %v1069_v28, %v1069_v28  ;;  %v1071_v36 = vpop.f32.mrb[5].mxu1  ;;  %v1144_v26 = vand.u32 2147483648, %v2217_v20  ;;  %vm1143_vm8 = vcmp.eq.f32.partialorder %v2217_v20, 0.0  ;;  %v1218_v12 = vmul.f32 %v1622_v16, %v1208_v27 }
 0x365   : > { %v1099_v38 = vmul.f32 %v1071_v36, %v1071_v36  ;;  %v1073_v39 = vpop.f32.mrb[6].mxu1 }
 0x366   : > { %v2222_v41 = vadd.f32 %v1106_v31, %v1098_v35  ;;  %v1100_v42 = vmul.f32 %v1073_v39, %v1073_v39  ;;  %v1075_v43 = vpop.f32.mrb[7].mxu1 }
 0x367   : > { %v2224_v47 = vadd.f32 %v1107_v37, %v1099_v38  ;;  %v1101_v48 = vmul.f32 %v1075_v43, %v1075_v43  ;;  %v1212_v43 = vpop.permute.xlu0 %1211 }
 0x368   : > { %1614 = vrsqrt.f32 %v2222_v41  ;;  %v2230_v51 = vadd.f32 %v1108_v45, %v1100_v42  ;;  %vm1148_vm9 = vcmp.eq.f32.partialorder %v2222_v41, inf  ;;  %vm1150_vm10 = vcmp.eq.f32.partialorder %v2222_v41, 0.0 }
 0x369   : > { %1616 = vrsqrt.f32 %v2224_v47  ;;  %v2232_v52 = vadd.f32 %v1109_v46, %v1101_v48  ;;  %vm1155_vm11 = vcmp.eq.f32.partialorder %v2224_v47, inf  ;;  %vm1157_vm13 = vcmp.eq.f32.partialorder %v2224_v47, 0.0 }
 0x36a   : > { %v1607_v54 = vpop.eup %1606  ;;  %vm1162_vm12 = vcmp.eq.f32.partialorder %v2230_v51, inf  ;;  %v1158_v28 = vand.u32 2147483648, %v2224_v47  ;;  %vm1164_vm0 = vcmp.eq.f32.partialorder %v2230_v51, 0.0 }
 0x36b   : > { %v1609_v1 = vpop.eup %1608  ;;  %v1119_v5 = vmul.f32 %v1607_v54, %v1110_v13  ;;  %1618 = vrsqrt.f32 %v2232_v52  ;;  %vm1169_vm14 = vcmp.eq.f32.partialorder %v2232_v52, inf  ;;  %v1172_v40 = vand.u32 2147483648, %v2232_v52 }
 0x36c   : > { %v1611_v2 = vpop.eup %1610  ;;  %v1126_v4 = vmul.f32 %v1609_v1, %v1111_v14  ;;  %1620 = vrsqrt.f32 %v2230_v51  ;;  %vm1171_vm15 = vcmp.eq.f32.partialorder %v2232_v52, 0.0 }
 0x36d   : > { %v1613_v8 = vpop.eup %1612  ;;  %v1121_v6 = vsel %vm1120_vm1, %v1110_v13, %v1119_v5  ;;  %v1133_v9 = vmul.f32 %v1611_v2, %v1112_v62  ;;  %v1623_v13 = vld [vmem:[%s1943_s29 + $0x28] sm:$0xff] }
 0x36e   : > { %v1124_v19 = vsel %vm1122_vm2, %v1123_v63, %v1121_v6  ;;  %v1128_v3 = vsel %vm1127_vm3, %v1111_v14, %v1126_v4  ;;  %v1140_v23 = vmul.f32 %v1613_v8, %v2217_v20  ;;  %v1219_v59 = vmul.f32 %v1623_v13, %v1208_v27  ;;  %v1625_v63 = vld [vmem:[%s1943_s29 + $0x30] sm:$0xff] }
 0x36f   : > { %v1131_v25 = vsel %vm1129_vm4, %v1130_v7, %v1128_v3  ;;  %v1190_v18 = vmul.f32 %v2211_v17, %v1124_v19  ;;  %v1135_v55 = vsel %vm1134_vm5, %v1112_v62, %v1133_v9  ;;  %v1151_v14 = vand.u32 2147483648, %v2222_v41 }
 0x370   : > { %v1191_v56 = vmul.f32 %v2211_v17, %v1131_v25  ;;  %v1138_v29 = vsel %vm1136_vm6, %v1137_v15, %v1135_v55  ;;  %v1142_v57 = vsel %vm1141_vm7, %v2217_v20, %v1140_v23 }
 0x371   : > { %v1145_v30 = vsel %vm1143_vm8, %v1144_v26, %v1142_v57  ;;  %v1192_v32 = vmul.f32 %v2215_v61, %v1138_v29  ;;  %v1222_v58 = vadd.f32 %v1214_v49, %v1190_v18 }
 0x372   : > { %v1615_v33 = vpop.eup %1614  ;;  %v1193_v10 = vmul.f32 %v2215_v61, %v1145_v30  ;;  %v1223_v11 = vadd.f32 %v1215_v50, %v1191_v56 }
 0x373   : > { %v1617_v22 = vpop.eup %1616  ;;  %v1147_v17 = vmul.f32 %v1615_v33, %v2222_v41  ;;  %1230 = vst [vmem:[%s2256_s12] sm:$0xff] %v1222_v58  ;;  %v1224_v60 = vadd.f32 %v1216_v53, %v1192_v32  ;;  %v1624_v53 = vld [vmem:[%s1943_s29 + $0x38] sm:$0xff]  ;;  %s1764_s29 = smov [#allocation7]  }
 0x374   : > { %1231 = vst [vmem:[%s2256_s12 + $0x8] sm:$0xff] %v1223_v11  ;;  %v1225_v24 = vadd.f32 %v1217_v0, %v1193_v10  ;;  %v1154_v61 = vmul.f32 %v1617_v22, %v2224_v47  ;;  %v1220_v0 = vmul.f32 %v1625_v63, %v1212_v43  ;;  %s1688_s7 = sshll.u32 %s1764_s29, 4  ;;  %s1689_s7 = int_to_ptr.vmem [resolvable:$false] %s1688_s7 }
 0x375   : > { %v1619_v62 = vpop.eup %1618  ;;  %v1149_v20 = vsel %vm1148_vm9, %v2222_v41, %v1147_v17  ;;  %1232 = vst [vmem:[%s2256_s12 + $0x10] sm:$0xff] %v1224_v60  ;;  %v1165_v41 = vand.u32 2147483648, %v2230_v51  ;;  %s1690_s26 = scalar_lea.vmem %s1689_s7, 2048  ;;  %p1691_p10 = scmp.lt.s32.totalorder %s2298_s13, %s1689_s7 }
 0x376   : > { %v1621_v31 = vpop.eup %1620  ;;  %v1152_v35 = vsel %vm1150_vm10, %v1151_v14, %v1149_v20  ;;  %v1168_v36 = vmul.f32 %v1619_v62, %v2232_v52  ;;  %1233 = vst [vmem:[%s2256_s12 + $0x18] sm:$0xff] %v1225_v24  ;;  %v1156_v37 = vsel %vm1155_vm11, %v2224_v47, %v1154_v61  ;;  %p1692_p13 = scmp.lt.s32.totalorder %s1690_s26, %s1684_s6 }
 0x377   : > { %v1194_v38 = vmul.f32 %v2213_v34, %v1152_v35  ;;  %v1161_v39 = vmul.f32 %v1621_v31, %v2230_v51  ;;  %v1159_v42 = vsel %vm1157_vm13, %v1158_v28, %v1156_v37 }
 0x378   : > { %v1170_v44 = vsel %vm1169_vm14, %v2232_v52, %v1168_v36  ;;  %v1195_v45 = vmul.f32 %v2213_v34, %v1159_v42  ;;  %v1221_v34 = vmul.f32 %v1624_v53, %v1212_v43  ;;  %p1693_p3 = por %p1692_p13, %p1691_p10 }
 0x379   : > { %v1163_v46 = vsel %vm1162_vm12, %v2230_v51, %v1161_v39  ;;  %v1173_v47 = vsel %vm1171_vm15, %v1172_v40, %v1170_v44  ;;  %v1226_v48 = vadd.f32 %v1218_v12, %v1194_v38 }
 0x37a   : > { %v1166_v49 = vsel %vm1164_vm0, %v1165_v41, %v1163_v46  ;;  %v1197_v50 = vmul.f32 %v2219_v21, %v1173_v47  ;;  %v1227_v52 = vadd.f32 %v1219_v59, %v1195_v45  ;;  %p1694_p7 = pnand %p1693_p3, %p1687_p8 }
 0x37b   : > { %v1196_v54 = vmul.f32 %v2219_v21, %v1166_v49  ;;  %1234 = vst [vmem:[%s2256_s12 + $0x20] sm:$0xff] %v1226_v48 }
 0x37c   : > { %1235 = vst [vmem:[%s2256_s12 + $0x28] sm:$0xff] %v1227_v52  ;;  %v1229_v51 = vadd.f32 %v1221_v34, %v1197_v50 }
 0x37d   : > { %v1228_v1 = vadd.f32 %v1220_v0, %v1196_v54 }
 0x37e   : > { %1237 = vst [vmem:[%s2256_s12 + $0x38] sm:$0xff] %v1229_v51 }
 0x37f   : > { %1236 = vst [vmem:[%s2256_s12 + $0x30] sm:$0xff] %v1228_v1 }
 0x380   : > { %1697 = shalt.err (!%p1694_p7)
}
 0x381   : > { %s1698_s8 = scalar_lea.hbm %s2296_s28, 1024  ;;  %s1702_s5 = scalar_lea.hbm %s2348_s4, 2048 }
 0x382   : > { %p1699_p9 = scmp.ne.s32.totalorder %s2296_s28, %s1698_s8  ;;  %p1703_p5 = scmp.lt.u32.totalorder %s2296_s28, %s2348_s4 }
 0x383   : > { %p1704_p11 = scmp.lt.u32.totalorder %s1702_s5, %s1698_s8  ;;  %p1706_p4 = scmp.lt.u32.totalorder %s1698_s8, %s2296_s28 }
 0x384   : > { %p1700_p1 = pnand %p1699_p9, %p1886_p12 }
 0x385   : > { %p1705_p2 = por %p1704_p11, %p1703_p5 }
 0x386   : > { %p1701_p0 = pneg %p1700_p1 }
 0x387   : > { %p1707_p6 = por %p1706_p4, %p1705_p2 }
 0x389   : > { %p1708_p8 = pnand %p1707_p6, %p1701_p0 }
 0x38b   : > { %1711 = shalt.err (!%p1708_p8)
}
 0x38c   : > { %s1765_s12 = smov 256   ;;  %s1766_s20 = smov 16  }
 0x38d   : > { %1439 = dma.vmem_to_hbm [thread:$0]  (%p1886_p12), %s2298_s13, 1024, %s2296_s28, %s1239_s10, %s1765_s12, %s1765_s12, %s1766_s20  }
 0x38e PF: > { %s1267_s9 = sand.u32 1, %s1742_s15   ;;  %p2363_p10 = scmp.ne.s32.totalorder %s2353_s22, 0 }
 0x38f   : > { %p2364_p13 = scmp.ge.s32.totalorder %s1754_s18, 2  ;;  %s1268_s19 = scalar_lea.sflag [#allocation4], %s1267_s9 }
 0x391   : > { %p1450_p3 = pnand %p2364_p13, %p2363_p10 }
 0x393   : > { %1737 = dma.done.wait (!%p1450_p3), %s1268_s19, 1024  }
 0x394   : > { %1739 = vsyncadd (!%p1450_p3), %s1268_s19, 4294966272  ;;  %p18_p7 = scmp.ge.s32.totalorder %s1848_s27, 4   ;;  %s2365_s15 = smov %s1746_s16 }
 0x395   : > { %s2366_s16 = smov %s1750_s17  ;;  %s2367_s17 = smov %s1882_s24 }
 0x396   : > { %s2368_s18 = smov %s1848_s27  ;;  %20 = sbr.rel (!%p18_p7) target bundleno = 6 (0x6), region = 85 }
 0x39d   :  { %1273 = vsyncpa [#allocation3], 1 }
 0x39e   :  { %1275 = vsyncpa [#allocation3 + $0x1], 1 }
 0x39f   :  { %1276 = vsyncpa [#allocation6], 1 }
 0x3a0   :  { %1277 = vsyncpa [#allocation4], 1 }
 0x3a1   :  { %1279 = vsyncpa [#allocation4 + $0x1], 1 }

</bundles_post_ra>
